<compile_context>
chip_gen: v5e
topology: v5e:2x2
jax: 0.10.0
libtpu: 0.0.40
codegen_flags: <defaults>
</compile_context>

<pallas_src>
import functools

import numpy as np
import jax
import jax.numpy as jnp
from jax import lax
from jax.experimental import pallas as pl
from jax.experimental.pallas import tpu as pltpu

KSIZE = 4
STRIDE = 2
PAD = 1
BN_EPS = 1e-5


def _round_up(x, m):
    return (x + m - 1) // m * m


# --------------------------------------------------------------------------- #
# Pass 1: im2col-free conv (64 shifted GEMMs) + BN partial stats
# --------------------------------------------------------------------------- #
def conv_stats_kernel(w_ref, mask_ref, z_ref, y_ref, stats_ref, acc_ref, *,
                      offsets, window_pad):
    """One (m_tile, phase) grid step.

    w_ref:     (8, 8, Cout, Cin) bf16  full weight, VMEM-resident
    mask_ref:  (1, TM)           f32   1.0 on valid output columns
    z_ref:     (1, Cin, TM)      bf16  this phase's input columns for this tile
    y_ref:     (Cout, TM)        bf16  conv output tile (written on last phase)
    stats_ref: (1, Cout, 2)      f32   per-tile [sum, sum_sq]
    acc_ref:   (Cout, TM)        f32   accumulator, resident across the phase axis

    NOTE: y_ref / stats_ref are written only on the LAST phase step.  That is
    correct only because the phase axis is the innermost ("arbitrary") grid
    axis and both output blocks keep a constant block index along it, so they
    stay VMEM-resident until the phase loop finishes.
    """
    ph = pl.program_id(1)

    @pl.when(ph == 0)
    def _init():
        acc_ref[...] = jnp.zeros_like(acc_ref)

    # Window = [tile | zeros].  Valid output columns never read past the real
    # per-sample data, so the zero tail only feeds cropped (masked) columns.
    zb = z_ref[0]                                             # (Cin, TM)
    cin, tm = zb.shape
    window = jnp.concatenate(
        [zb, jnp.zeros((cin, window_pad), dtype=zb.dtype)], axis=-1)

    contrib = None
    for t, off in enumerate(offsets):                         # 8 taps per phase
        w_t = w_ref[ph, t]                                    # (Cout, Cin) bf16
        x_t = window[:, off:off + tm] if off else zb          # (Cin, TM)  bf16
        d = jnp.dot(w_t, x_t, preferred_element_type=jnp.float32)
        contrib = d if contrib is None else contrib + d
    acc_ref[...] += contrib

    @pl.when(ph == pl.num_programs(1) - 1)
    def _finalize():
        y = acc_ref[...] * mask_ref[...]                      # zero cropped cols
        y_ref[...] = y.astype(y_ref.dtype)                    # bf16 intermediate
        # E[y^2]-E[y]^2 in f32: fine for near-zero-mean activations; a
        # centered/Welford variant would be needed for large-mean regimes.
        s1 = jnp.sum(y, axis=1, keepdims=True)                # (Cout, 1)
        s2 = jnp.sum(y * y, axis=1, keepdims=True)            # (Cout, 1)
        stats_ref[...] = jnp.concatenate([s1, s2], axis=1)[None]


# --------------------------------------------------------------------------- #
# Pass 2: BN apply (scale/shift) + ReLU, one whole sample per grid step
# --------------------------------------------------------------------------- #
def bn_relu_kernel(scale_ref, shift_ref, y_ref, o_ref):
    y = y_ref[...].astype(jnp.float32)                        # (Cout, S_pad)
    o_ref[...] = jnp.maximum(y * scale_ref[...] + shift_ref[...], 0.0)[None]


# --------------------------------------------------------------------------- #
# Forward
# --------------------------------------------------------------------------- #
def block_forward(x, weight, *, target_tm=1024):
    """x: (N, Cin, D, H, W) f32; weight: (Cout, Cin, 4, 4, 4) f32."""
    N, Cin, D, H, W = x.shape
    Cout = weight.shape[0]
    assert D % 2 == 0 and H % 2 == 0 and W % 2 == 0, \
        "stride-2 k=4 p=1 block expects even spatial dims"
    Do, Ho, Wo = D // 2, H // 2, W // 2

    # The shifted-GEMM formulation works in a padded output space with one
    # extra (cropped) plane per spatial dim; wrap-around garbage lands only in
    # those cropped planes / the per-sample pad columns.
    sp = (Do + 1) * (Ho + 1) * (Wo + 1)                 # padded per-sample cols
    max_off = (Ho + 1) * (Wo + 1) + (Wo + 1) + 1        # offset of tap (1,1,1)
    window_pad = _round_up(max_off, 128)
    s_pad = _round_up(sp, 128)

    # M tiles are whole samples so valid columns never read across tiles.
    spt = max(1, min(N, target_tm // s_pad))
    n_m = -(-N // spt)
    if n_m < 2 and N >= 2:                              # keep >=2 M tiles so the
        spt = (N + 1) // 2                              # v7x megacore has work on
        n_m = -(-N // spt)                              # both TensorCores
    N_pad = n_m * spt
    TM = spt * s_pad
    M_pad = N_pad * s_pad

    xb = x.astype(jnp.bfloat16)
    wb = weight.astype(jnp.bfloat16)
    if N_pad > N:
        xb = jnp.pad(xb, ((0, N_pad - N), (0, 0), (0, 0), (0, 0), (0, 0)))

    # Channel-major + reflect pad, then one-time 8-way stride-2 phase split
    # (the only XLA transpose; ~1x input size, replaces the 8x im2col).
    xc = jnp.transpose(xb, (1, 0, 2, 3, 4))                   # (Cin, N, D, H, W)
    xc = jnp.pad(xc, ((0, 0), (0, 0), (PAD, PAD), (PAD, PAD), (PAD, PAD)),
                 mode="reflect")
    z = xc.reshape(Cin, N_pad, Do + 1, 2, Ho + 1, 2, Wo + 1, 2)
    z = jnp.transpose(z, (3, 5, 7, 0, 1, 2, 4, 6))            # (2,2,2,Cin,N,...)
    z = z.reshape(8, Cin, N_pad, sp)
    z = jnp.pad(z, ((0, 0), (0, 0), (0, 0), (0, s_pad - sp)))
    z = z.reshape(8, Cin, M_pad)

    # Weight regrouped per (phase, offset): w_r[r, p, co, ci] = W[co, ci, 2p+r, ...]
    w_r = wb.reshape(Cout, Cin, 2, 2, 2, 2, 2, 2)             # (co,ci,pd,rd,ph,rh,pw,rw)
    w_r = jnp.transpose(w_r, (3, 5, 7, 2, 4, 6, 0, 1)).reshape(8, 8, Cout, Cin)

    # In-sample flat offsets of the 8 (pd, ph, pw) taps of one phase.
    offsets = tuple(pd * (Ho + 1) * (Wo + 1) + ph_ * (Wo + 1) + pw
                    for pd in range(2) for ph_ in range(2) for pw in range(2))

    # Valid-output-column mask (same pattern for every sample; built host-side).
    m3 = np.zeros((Do + 1, Ho + 1, Wo + 1), np.float32)
    m3[:Do, :Ho, :Wo] = 1.0
    col = np.zeros((s_pad,), np.float32)
    col[:sp] = m3.reshape(-1)
    col_mask = jnp.asarray(np.tile(col, spt)[None, :])        # (1, TM)

    kernel = functools.partial(conv_stats_kernel, offsets=offsets,
                               window_pad=window_pad)

    # ---- pass 1: conv (64 shifted GEMMs) + per-tile BN partial sums ---------
    y, stats = pl.pallas_call(
        kernel,
        out_shape=(
            jax.ShapeDtypeStruct((Cout, M_pad), jnp.bfloat16),
            jax.ShapeDtypeStruct((n_m, Cout, 2), jnp.float32),
        ),
        grid_spec=pltpu.PrefetchScalarGridSpec(
            num_scalar_prefetch=0,
            grid=(n_m, 8),                         # phase innermost (reduction)
            in_specs=[
                pl.BlockSpec((8, 8, Cout, Cin), lambda m, p: (0, 0, 0, 0)),
                pl.BlockSpec((1, TM), lambda m, p: (0, 0)),
                pl.BlockSpec((1, Cin, TM), lambda m, p: (p, 0, m)),
            ],
            out_specs=[
                pl.BlockSpec((Cout, TM), lambda m, p: (0, m)),
                pl.BlockSpec((1, Cout, 2), lambda m, p: (m, 0, 0)),
            ],
            scratch_shapes=[pltpu.VMEM((Cout, TM), jnp.float32)],
        ),
        compiler_params=pltpu.CompilerParams(
            dimension_semantics=("parallel", "arbitrary"),
            vmem_limit_bytes=32 * 1024 * 1024,
        ),
    )(w_r, col_mask, z)

    # ---- tiny cross-tile reduction -> per-channel scale / shift (f32) -------
    m_true = float(N * Do * Ho * Wo)                # masked/padded cols are zero
    ch_sum = jnp.sum(stats[:, :, 0], axis=0)
    ch_sq = jnp.sum(stats[:, :, 1], axis=0)
    mean = ch_sum / m_true
    var = jnp.maximum(ch_sq / m_true - mean * mean, 0.0)
    scale = lax.rsqrt(var + BN_EPS).reshape(Cout, 1)          # gamma = 1
    shift = (-mean).reshape(Cout, 1) * scale                  # beta  = 0

    # ---- pass 2: BN apply + ReLU, written directly in (N, Cout, S_pad) ------
    # TODO(synk): for very large Cout*S_pad add a spatial/Cout split here.
    out_p = pl.pallas_call(
        bn_relu_kernel,
        out_shape=jax.ShapeDtypeStruct((N_pad, Cout, s_pad), jnp.float32),
        grid_spec=pltpu.PrefetchScalarGridSpec(
            num_scalar_prefetch=0,
            grid=(N_pad,),
            in_specs=[
                pl.BlockSpec((Cout, 1), lambda n: (0, 0)),
                pl.BlockSpec((Cout, 1), lambda n: (0, 0)),
                pl.BlockSpec((Cout, s_pad), lambda n: (0, n)),
            ],
            out_specs=pl.BlockSpec((1, Cout, s_pad), lambda n: (n, 0, 0)),
        ),
        compiler_params=pltpu.CompilerParams(
            dimension_semantics=("parallel",),
            vmem_limit_bytes=32 * 1024 * 1024,
        ),
    )(scale, shift, y)

    # Crop the padded planes / padded samples (no transpose needed).
    out = out_p[:N, :, :sp].reshape(N, Cout, Do + 1, Ho + 1, Wo + 1)
    return out[:, :, :Do, :Ho, :Wo]


# --------------------------------------------------------------------------- #
# Pure-JAX reference (bf16 conv operands, f32 conv intermediate / BN)
# --------------------------------------------------------------------------- #
def reference_forward(x, weight):
    xb = x.astype(jnp.bfloat16)
    wb = weight.astype(jnp.bfloat16)
    xp = jnp.pad(xb, ((0, 0), (0, 0), (PAD, PAD), (PAD, PAD), (PAD, PAD)),
                 mode="reflect")
    y = lax.conv_general_dilated(
        xp, wb,
        window_strides=(STRIDE, STRIDE, STRIDE),
        padding="VALID",
        dimension_numbers=("NCDHW", "OIDHW", "NCDHW"),
        preferred_element_type=jnp.float32)
    mean = jnp.mean(y, axis=(0, 2, 3, 4), keepdims=True)
    var = jnp.mean((y - mean) ** 2, axis=(0, 2, 3, 4), keepdims=True)
    return jnp.maximum((y - mean) * lax.rsqrt(var + BN_EPS), 0.0)


if __name__ == "__main__":
    key = jax.random.PRNGKey(0)
    k_x, k_w = jax.random.split(key)

    N, Cin, Cout = 2, 4, 8
    D = H = W = 8                           # output: (2, 8, 4, 4, 4)

    x = jax.random.normal(k_x, (N, Cin, D, H, W), dtype=jnp.float32)

    # kaiming_normal_(mode='fan_in', nonlinearity='relu'): std = sqrt(2 / fan_in)
    fan_in = Cin * KSIZE ** 3
    w_std = (2.0 / fan_in) ** 0.5
    weight = w_std * jax.random.normal(
        k_w, (Cout, Cin, KSIZE, KSIZE, KSIZE), dtype=jnp.float32)

    # target_tm=128 -> one sample per tile (n_m == 2): exercises the multi-tile
    # accumulator init/finalize path and the cross-tile BN stats reduction.
    fwd = jax.jit(functools.partial(block_forward, target_tm=128))
    out = jax.block_until_ready(fwd(x, weight))

    ref = jax.block_until_ready(reference_forward(x, weight))
    assert out.shape == (N, Cout, D // 2, H // 2, W // 2), out.shape
    # bf16 conv operands + bf16 conv-output intermediate (reference keeps the
    # conv intermediate in f32) => a few 1e-3 of absolute error post-BN.
    max_err = float(jnp.max(jnp.abs(out - ref)))
    assert max_err < 2e-2, max_err

    print("KERNEL_OK")
</pallas_src>

<mosaic_0001>
module attributes {stable_mosaic.version = 11 : i64} {
  func.func @conv_stats_kernel(%arg0: i32, %arg1: i32, %arg2: memref<8x8x8x4xbf16, #tpu.memory_space<vmem>>, %arg3: memref<1x128xf32, #tpu.memory_space<vmem>>, %arg4: memref<1x4x128xbf16, #tpu.memory_space<vmem>>, %arg5: memref<8x128xbf16, #tpu.memory_space<vmem>>, %arg6: memref<1x8x2xf32, #tpu.memory_space<vmem>>, %arg7: memref<8x128xf32, #tpu.memory_space<vmem>>) attributes {dimension_semantics = [#tpu.dimension_semantics<parallel>, #tpu.dimension_semantics<arbitrary>], iteration_bounds = array<i64: 2, 8>, scalar_prefetch = 0 : i64, scratch_operands = 1 : i64, tpu.core_type = #tpu.core_type<tc>, window_params = [{pipeline_mode = #tpu.pipeline_mode<synchronous>, transform_indices = @transform_0, window_bounds = array<i64: 8, 8, 8, 4>}, {pipeline_mode = #tpu.pipeline_mode<synchronous>, transform_indices = @transform_1, window_bounds = array<i64: 1, 128>}, {transform_indices = @transform_2, window_bounds = array<i64: 1, 4, 128>}, {transform_indices = @transform_3, window_bounds = array<i64: 8, 128>}, {transform_indices = @transform_4, window_bounds = array<i64: 1, 8, 2>}]} {
    %c0_i32 = arith.constant 0 : i32
    %0 = arith.cmpi eq, %arg1, %c0_i32 : i32
    %1 = arith.extui %0 : i1 to i32
    %c0_i32_0 = arith.constant 0 : i32
    %2 = arith.cmpi ne, %1, %c0_i32_0 : i32
    scf.if %2 {
      %cst_33 = arith.constant 0.000000e+00 : f32
      %59 = vector.broadcast %cst_33 : f32 to vector<8x128xf32>
      %c0_34 = arith.constant 0 : index
      %c0_35 = arith.constant 0 : index
      %60 = vector.load %arg7[%c0_34, %c0_35] : memref<8x128xf32, #tpu.memory_space<vmem>>, vector<8x128xf32>
      tpu.vector_store %arg7[%c0_34, %c0_35], %59 {strides = array<i32>} : memref<8x128xf32, #tpu.memory_space<vmem>>, vector<8x128xf32>,
    } else {
    }
    %c0 = arith.constant 0 : index
    %c0_1 = arith.constant 0 : index
    %c0_2 = arith.constant 0 : index
    %3 = vector.load %arg4[%c0, %c0_1, %c0_2] : memref<1x4x128xbf16, #tpu.memory_space<vmem>>, vector<1x4x128xbf16>
    %4 = vector.shape_cast %3 : vector<1x4x128xbf16> to vector<4x128xbf16>
    %cst = arith.constant 0.000000e+00 : bf16
    %5 = vector.broadcast %cst : bf16 to vector<4x128xbf16>
    %6 = tpu.concatenate %4, %5 in 1 : vector<4x128xbf16>, vector<4x128xbf16> -> vector<4x256xbf16>
    %7 = arith.index_cast %arg1 : i32 to index
    %c0_3 = arith.constant 0 : index
    %c0_4 = arith.constant 0 : index
    %c0_5 = arith.constant 0 : index
    %8 = vector.load %arg2[%7, %c0_3, %c0_4, %c0_5] : memref<8x8x8x4xbf16, #tpu.memory_space<vmem>>, vector<1x1x8x4xbf16>
    %9 = vector.shape_cast %8 : vector<1x1x8x4xbf16> to vector<8x4xbf16>
    %cst_6 = arith.constant dense<0.000000e+00> : vector<8x128xf32>
    %10 = tpu.matmul %9, %4, %cst_6 {dimension_numbers = #tpu.dot_dimension_numbers<[1], [0], [0], [1], [0, 0, 1, 1], [], []>} : vector<8x4xbf16>, vector<4x128xbf16>, vector<8x128xf32> -> vector<8x128xf32>
    %11 = arith.index_cast %arg1 : i32 to index
    %c1 = arith.constant 1 : index
    %c0_7 = arith.constant 0 : index
    %c0_8 = arith.constant 0 : index
    %12 = vector.load %arg2[%11, %c1, %c0_7, %c0_8] : memref<8x8x8x4xbf16, #tpu.memory_space<vmem>>, vector<1x1x8x4xbf16>
    %13 = vector.shape_cast %12 : vector<1x1x8x4xbf16> to vector<8x4xbf16>
    %14 = vector.extract_strided_slice %6 {offsets = [0, 1], sizes = [4, 128], strides = [1, 1]} : vector<4x256xbf16> to vector<4x128xbf16>
    %cst_9 = arith.constant dense<0.000000e+00> : vector<8x128xf32>
    %15 = tpu.matmul %13, %14, %cst_9 {dimension_numbers = #tpu.dot_dimension_numbers<[1], [0], [0], [1], [0, 0, 1, 1], [], []>} : vector<8x4xbf16>, vector<4x128xbf16>, vector<8x128xf32> -> vector<8x128xf32>
    %16 = arith.addf %10, %15 : vector<8x128xf32>
    %17 = arith.index_cast %arg1 : i32 to index
    %c2 = arith.constant 2 : index
    %c0_10 = arith.constant 0 : index
    %c0_11 = arith.constant 0 : index
    %18 = vector.load %arg2[%17, %c2, %c0_10, %c0_11] : memref<8x8x8x4xbf16, #tpu.memory_space<vmem>>, vector<1x1x8x4xbf16>
    %19 = vector.shape_cast %18 : vector<1x1x8x4xbf16> to vector<8x4xbf16>
    %20 = vector.extract_strided_slice %6 {offsets = [0, 5], sizes = [4, 128], strides = [1, 1]} : vector<4x256xbf16> to vector<4x128xbf16>
    %cst_12 = arith.constant dense<0.000000e+00> : vector<8x128xf32>
    %21 = tpu.matmul %19, %20, %cst_12 {dimension_numbers = #tpu.dot_dimension_numbers<[1], [0], [0], [1], [0, 0, 1, 1], [], []>} : vector<8x4xbf16>, vector<4x128xbf16>, vector<8x128xf32> -> vector<8x128xf32>
    %22 = arith.addf %16, %21 : vector<8x128xf32>
    %23 = arith.index_cast %arg1 : i32 to index
    %c3 = arith.constant 3 : index
    %c0_13 = arith.constant 0 : index
    %c0_14 = arith.constant 0 : index
    %24 = vector.load %arg2[%23, %c3, %c0_13, %c0_14] : memref<8x8x8x4xbf16, #tpu.memory_space<vmem>>, vector<1x1x8x4xbf16>
    %25 = vector.shape_cast %24 : vector<1x1x8x4xbf16> to vector<8x4xbf16>
    %26 = vector.extract_strided_slice %6 {offsets = [0, 6], sizes = [4, 128], strides = [1, 1]} : vector<4x256xbf16> to vector<4x128xbf16>
    %cst_15 = arith.constant dense<0.000000e+00> : vector<8x128xf32>
    %27 = tpu.matmul %25, %26, %cst_15 {dimension_numbers = #tpu.dot_dimension_numbers<[1], [0], [0], [1], [0, 0, 1, 1], [], []>} : vector<8x4xbf16>, vector<4x128xbf16>, vector<8x128xf32> -> vector<8x128xf32>
    %28 = arith.addf %22, %27 : vector<8x128xf32>
    %29 = arith.index_cast %arg1 : i32 to index
    %c4 = arith.constant 4 : index
    %c0_16 = arith.constant 0 : index
    %c0_17 = arith.constant 0 : index
    %30 = vector.load %arg2[%29, %c4, %c0_16, %c0_17] : memref<8x8x8x4xbf16, #tpu.memory_space<vmem>>, vector<1x1x8x4xbf16>
    %31 = vector.shape_cast %30 : vector<1x1x8x4xbf16> to vector<8x4xbf16>
    %32 = vector.extract_strided_slice %6 {offsets = [0, 25], sizes = [4, 128], strides = [1, 1]} : vector<4x256xbf16> to vector<4x128xbf16>
    %cst_18 = arith.constant dense<0.000000e+00> : vector<8x128xf32>
    %33 = tpu.matmul %31, %32, %cst_18 {dimension_numbers = #tpu.dot_dimension_numbers<[1], [0], [0], [1], [0, 0, 1, 1], [], []>} : vector<8x4xbf16>, vector<4x128xbf16>, vector<8x128xf32> -> vector<8x128xf32>
    %34 = arith.addf %28, %33 : vector<8x128xf32>
    %35 = arith.index_cast %arg1 : i32 to index
    %c5 = arith.constant 5 : index
    %c0_19 = arith.constant 0 : index
    %c0_20 = arith.constant 0 : index
    %36 = vector.load %arg2[%35, %c5, %c0_19, %c0_20] : memref<8x8x8x4xbf16, #tpu.memory_space<vmem>>, vector<1x1x8x4xbf16>
    %37 = vector.shape_cast %36 : vector<1x1x8x4xbf16> to vector<8x4xbf16>
    %38 = vector.extract_strided_slice %6 {offsets = [0, 26], sizes = [4, 128], strides = [1, 1]} : vector<4x256xbf16> to vector<4x128xbf16>
    %cst_21 = arith.constant dense<0.000000e+00> : vector<8x128xf32>
    %39 = tpu.matmul %37, %38, %cst_21 {dimension_numbers = #tpu.dot_dimension_numbers<[1], [0], [0], [1], [0, 0, 1, 1], [], []>} : vector<8x4xbf16>, vector<4x128xbf16>, vector<8x128xf32> -> vector<8x128xf32>
    %40 = arith.addf %34, %39 : vector<8x128xf32>
    %41 = arith.index_cast %arg1 : i32 to index
    %c6 = arith.constant 6 : index
    %c0_22 = arith.constant 0 : index
    %c0_23 = arith.constant 0 : index
    %42 = vector.load %arg2[%41, %c6, %c0_22, %c0_23] : memref<8x8x8x4xbf16, #tpu.memory_space<vmem>>, vector<1x1x8x4xbf16>
    %43 = vector.shape_cast %42 : vector<1x1x8x4xbf16> to vector<8x4xbf16>
    %44 = vector.extract_strided_slice %6 {offsets = [0, 30], sizes = [4, 128], strides = [1, 1]} : vector<4x256xbf16> to vector<4x128xbf16>
    %cst_24 = arith.constant dense<0.000000e+00> : vector<8x128xf32>
    %45 = tpu.matmul %43, %44, %cst_24 {dimension_numbers = #tpu.dot_dimension_numbers<[1], [0], [0], [1], [0, 0, 1, 1], [], []>} : vector<8x4xbf16>, vector<4x128xbf16>, vector<8x128xf32> -> vector<8x128xf32>
    %46 = arith.addf %40, %45 : vector<8x128xf32>
    %47 = arith.index_cast %arg1 : i32 to index
    %c7 = arith.constant 7 : index
    %c0_25 = arith.constant 0 : index
    %c0_26 = arith.constant 0 : index
    %48 = vector.load %arg2[%47, %c7, %c0_25, %c0_26] : memref<8x8x8x4xbf16, #tpu.memory_space<vmem>>, vector<1x1x8x4xbf16>
    %49 = vector.shape_cast %48 : vector<1x1x8x4xbf16> to vector<8x4xbf16>
    %50 = vector.extract_strided_slice %6 {offsets = [0, 31], sizes = [4, 128], strides = [1, 1]} : vector<4x256xbf16> to vector<4x128xbf16>
    %cst_27 = arith.constant dense<0.000000e+00> : vector<8x128xf32>
    %51 = tpu.matmul %49, %50, %cst_27 {dimension_numbers = #tpu.dot_dimension_numbers<[1], [0], [0], [1], [0, 0, 1, 1], [], []>} : vector<8x4xbf16>, vector<4x128xbf16>, vector<8x128xf32> -> vector<8x128xf32>
    %52 = arith.addf %46, %51 : vector<8x128xf32>
    %c0_28 = arith.constant 0 : index
    %c0_29 = arith.constant 0 : index
    %53 = vector.load %arg7[%c0_28, %c0_29] : memref<8x128xf32, #tpu.memory_space<vmem>>, vector<8x128xf32>
    %54 = arith.addf %53, %52 : vector<8x128xf32>
    %c0_30 = arith.constant 0 : index
    %c0_31 = arith.constant 0 : index
    %55 = vector.load %arg7[%c0_30, %c0_31] : memref<8x128xf32, #tpu.memory_space<vmem>>, vector<8x128xf32>
    tpu.vector_store %arg7[%c0_30, %c0_31], %54 {strides = array<i32>} : memref<8x128xf32, #tpu.memory_space<vmem>>, vector<8x128xf32>,
    %c7_i32 = arith.constant 7 : i32
    %56 = arith.cmpi eq, %arg1, %c7_i32 : i32
    %57 = arith.extui %56 : i1 to i32
    %c0_i32_32 = arith.constant 0 : i32
    %58 = arith.cmpi ne, %57, %c0_i32_32 : i32
    scf.if %58 {
      %c0_33 = arith.constant 0 : index
      %c0_34 = arith.constant 0 : index
      %59 = vector.load %arg7[%c0_33, %c0_34] : memref<8x128xf32, #tpu.memory_space<vmem>>, vector<8x128xf32>
      %c0_35 = arith.constant 0 : index
      %c0_36 = arith.constant 0 : index
      %60 = vector.load %arg3[%c0_35, %c0_36] : memref<1x128xf32, #tpu.memory_space<vmem>>, vector<1x128xf32>
      %61 = vector.broadcast %60 : vector<1x128xf32> to vector<8x128xf32>
      %62 = arith.mulf %59, %61 : vector<8x128xf32>
      %63 = arith.truncf %62 : vector<8x128xf32> to vector<8x128xbf16>
      %c0_37 = arith.constant 0 : index
      %c0_38 = arith.constant 0 : index
      %64 = vector.load %arg5[%c0_37, %c0_38] : memref<8x128xbf16, #tpu.memory_space<vmem>>, vector<8x128xbf16>
      tpu.vector_store %arg5[%c0_37, %c0_38], %63 {strides = array<i32>} : memref<8x128xbf16, #tpu.memory_space<vmem>>, vector<8x128xbf16>,
      %cst_39 = arith.constant dense<0.000000e+00> : vector<8xf32>
      %65 = vector.multi_reduction <add>, %62, %cst_39 [1] : vector<8x128xf32> to vector<8xf32>
      %66 = vector.shape_cast %65 : vector<8xf32> to vector<8x1xf32>
      %67 = arith.mulf %62, %62 : vector<8x128xf32>
      %cst_40 = arith.constant dense<0.000000e+00> : vector<8xf32>
      %68 = vector.multi_reduction <add>, %67, %cst_40 [1] : vector<8x128xf32> to vector<8xf32>
      %69 = vector.shape_cast %68 : vector<8xf32> to vector<8x1xf32>
      %70 = tpu.concatenate %66, %69 in 1 : vector<8x1xf32>, vector<8x1xf32> -> vector<8x2xf32>
      %71 = vector.shape_cast %70 : vector<8x2xf32> to vector<1x8x2xf32>
      %c0_41 = arith.constant 0 : index
      %c0_42 = arith.constant 0 : index
      %c0_43 = arith.constant 0 : index
      %72 = vector.load %arg6[%c0_41, %c0_42, %c0_43] : memref<1x8x2xf32, #tpu.memory_space<vmem>>, vector<1x8x2xf32>
      tpu.vector_store %arg6[%c0_41, %c0_42, %c0_43], %71 {strides = array<i32>} : memref<1x8x2xf32, #tpu.memory_space<vmem>>, vector<1x8x2xf32>,
    } else {
    }
    return
  }
  func.func @transform_0(%arg0: i32, %arg1: i32) -> (i32, i32, i32, i32) {
    %c0_i32 = arith.constant 0 : i32
    %c0_i32_0 = arith.constant 0 : i32
    %c0_i32_1 = arith.constant 0 : i32
    %c0_i32_2 = arith.constant 0 : i32
    %c0_i32_3 = arith.constant 0 : i32
    return %c0_i32, %c0_i32_0, %c0_i32_1, %c0_i32_2 : i32, i32, i32, i32
  }
  func.func @transform_1(%arg0: i32, %arg1: i32) -> (i32, i32) {
    %c0_i32 = arith.constant 0 : i32
    %c0_i32_0 = arith.constant 0 : i32
    %c0_i32_1 = arith.constant 0 : i32
    return %c0_i32, %c0_i32_0 : i32, i32
  }
  func.func @transform_2(%arg0: i32, %arg1: i32) -> (i32, i32, i32) {
    %c0_i32 = arith.constant 0 : i32
    %c0_i32_0 = arith.constant 0 : i32
    return %arg1, %c0_i32, %arg0 : i32, i32, i32
  }
  func.func @transform_3(%arg0: i32, %arg1: i32) -> (i32, i32) {
    %c0_i32 = arith.constant 0 : i32
    %c0_i32_0 = arith.constant 0 : i32
    return %c0_i32, %arg0 : i32, i32
  }
  func.func @transform_4(%arg0: i32, %arg1: i32) -> (i32, i32, i32) {
    %c0_i32 = arith.constant 0 : i32
    %c0_i32_0 = arith.constant 0 : i32
    %c0_i32_1 = arith.constant 0 : i32
    return %arg0, %c0_i32, %c0_i32_0 : i32, i32, i32
  }
}

module attributes {stable_mosaic.version = 11 : i64} {
  func.func @bn_relu_kernel(%arg0: i32, %arg1: memref<8x1xf32, #tpu.memory_space<vmem>>, %arg2: memref<8x1xf32, #tpu.memory_space<vmem>>, %arg3: memref<8x128xbf16, #tpu.memory_space<vmem>>, %arg4: memref<1x8x128xf32, #tpu.memory_space<vmem>>) attributes {dimension_semantics = [#tpu.dimension_semantics<parallel>], iteration_bounds = array<i64: 2>, scalar_prefetch = 0 : i64, scratch_operands = 0 : i64, tpu.core_type = #tpu.core_type<tc>, window_params = [{pipeline_mode = #tpu.pipeline_mode<synchronous>, transform_indices = @transform_0, window_bounds = array<i64: 8, 1>}, {pipeline_mode = #tpu.pipeline_mode<synchronous>, transform_indices = @transform_1, window_bounds = array<i64: 8, 1>}, {transform_indices = @transform_2, window_bounds = array<i64: 8, 128>}, {transform_indices = @transform_3, window_bounds = array<i64: 1, 8, 128>}]} {
    %c0 = arith.constant 0 : index
    %c0_0 = arith.constant 0 : index
    %0 = vector.load %arg3[%c0, %c0_0] : memref<8x128xbf16, #tpu.memory_space<vmem>>, vector<8x128xbf16>
    %1 = arith.extf %0 : vector<8x128xbf16> to vector<8x128xf32>
    %c0_1 = arith.constant 0 : index
    %c0_2 = arith.constant 0 : index
    %2 = vector.load %arg1[%c0_1, %c0_2] : memref<8x1xf32, #tpu.memory_space<vmem>>, vector<8x1xf32>
    %3 = vector.broadcast %2 : vector<8x1xf32> to vector<8x128xf32>
    %4 = arith.mulf %1, %3 : vector<8x128xf32>
    %c0_3 = arith.constant 0 : index
    %c0_4 = arith.constant 0 : index
    %5 = vector.load %arg2[%c0_3, %c0_4] : memref<8x1xf32, #tpu.memory_space<vmem>>, vector<8x1xf32>
    %6 = vector.broadcast %5 : vector<8x1xf32> to vector<8x128xf32>
    %7 = arith.addf %4, %6 : vector<8x128xf32>
    %cst = arith.constant 0.000000e+00 : f32
    %8 = vector.broadcast %cst : f32 to vector<8x128xf32>
    %9 = arith.maximumf %7, %8 : vector<8x128xf32>
    %10 = vector.shape_cast %9 : vector<8x128xf32> to vector<1x8x128xf32>
    %c0_5 = arith.constant 0 : index
    %c0_6 = arith.constant 0 : index
    %c0_7 = arith.constant 0 : index
    %11 = vector.load %arg4[%c0_5, %c0_6, %c0_7] : memref<1x8x128xf32, #tpu.memory_space<vmem>>, vector<1x8x128xf32>
    tpu.vector_store %arg4[%c0_5, %c0_6, %c0_7], %10 {strides = array<i32>} : memref<1x8x128xf32, #tpu.memory_space<vmem>>, vector<1x8x128xf32>,
    return
  }
  func.func @transform_0(%arg0: i32) -> (i32, i32) {
    %c0_i32 = arith.constant 0 : i32
    %c0_i32_0 = arith.constant 0 : i32
    %c0_i32_1 = arith.constant 0 : i32
    return %c0_i32, %c0_i32_0 : i32, i32
  }
  func.func @transform_1(%arg0: i32) -> (i32, i32) {
    %c0_i32 = arith.constant 0 : i32
    %c0_i32_0 = arith.constant 0 : i32
    %c0_i32_1 = arith.constant 0 : i32
    return %c0_i32, %c0_i32_0 : i32, i32
  }
  func.func @transform_2(%arg0: i32) -> (i32, i32) {
    %c0_i32 = arith.constant 0 : i32
    %c0_i32_0 = arith.constant 0 : i32
    return %c0_i32, %arg0 : i32, i32
  }
  func.func @transform_3(%arg0: i32) -> (i32, i32, i32) {
    %c0_i32 = arith.constant 0 : i32
    %c0_i32_0 = arith.constant 0 : i32
    %c0_i32_1 = arith.constant 0 : i32
    return %arg0, %c0_i32, %c0_i32_0 : i32, i32, i32
  }
}

</mosaic_0001>

<bundles_post_ra>
// kernel: mul.3
= control target key start
LH: loop header
LB: loop body
LE: loop exit
PB: predicated region body
PF: predicated region fallthrough
CT: control target
= control target key end

     0   :  { %s34_s0 = inlined_call_operand.vmem [shape: f32[8,1], index: 0, kind: input, shape index: {}]   ;;  %s35_s1 = inlined_call_operand.vmem [shape: f32[8,1], index: 1, kind: input, shape index: {}]   ;;  %s36_s2 = inlined_call_operand.vmem [shape: f32[8,1], index: 2, kind: output, shape index: {}]  }
   0x1   :  { %v3_v0 = vld [vmem:[%s34_s0] sm:$0xff] }
   0x2   :  { %v4_v1 = vld [vmem:[%s35_s1] sm:$0xff] }
   0x3   :  { %v7_v2 = vmul.f32 %v4_v1, %v3_v0 }
   0x5   :  { %9 = vst [vmem:[%s36_s2] sm:$0xff] %v7_v2 }

// kernel: block_forward.2
= control target key start
LH: loop header
LB: loop body
LE: loop exit
PB: predicated region body
PF: predicated region fallthrough
CT: control target
= control target key end

     0   :  { %s804_s15 = smov 0   ;;  %s806_s16 = smov 0   ;;  %s903_s0 = inlined_call_operand.vmem [shape: bf16[8,8,8,4], index: 0, kind: input, shape index: {}]   ;;  %s904_s1 = inlined_call_operand.vmem [shape: f32[1,128], index: 1, kind: input, shape index: {}]   ;;  %s905_s2 = inlined_call_operand.vmem [shape: bf16[8,4,256], index: 2, kind: input, shape index: {}]   ;;  %s906_s3 = inlined_call_operand.vmem [shape: bf16[8,256], index: 3, kind: output, shape index: {0}]   ;;  %s907_s4 = inlined_call_operand.vmem [shape: f32[2,8,2], index: 4, kind: output, shape index: {1}]  }
   0x1   :  { %s808_s17 = smov 0   ;;  %s810_s18 = smov 0  }
   0x2   :  { %s812_s19 = smov 0  }
   0x3 LB: > { %s24_s20 = sadd.s32 1, %s760_s17  ;;  %s27_s21 = sadd.s32 1, %s764_s18  ;;  %s768_s19 = sphi %s812_s19, %s15_s19   ;;  %s764_s18 = sphi %s810_s18, %s911_s18   ;;  %s760_s17 = sphi %s808_s17, %s910_s17   ;;  %s756_s16 = sphi %s806_s16, %s909_s16   ;;  %s752_s15 = sphi %s804_s15, %s908_s15  }
   0x4   : > { %p25_p0 = scmp.ge.s32.totalorder %s24_s20, 8  ;;  %p632_p1 = scmp.ge.s32.totalorder %s768_s19, 1 }
   0x5   : > { %p182_p2 = scmp.lt.s32.totalorder %s768_s19, 17 }
   0x6   : > { %s913_s20 = smov (%p25_p0, %s24_s20), 0  ;;  %s915_s21 = smov (!%p25_p0, %s27_s21), %s764_s18 }
   0x7   : > { %p183_p3 = pnand %p632_p1, %p182_p2  ;;  %p29_p4 = scmp.ge.s32.totalorder %s915_s21, 2 }
   0x8   : > { %p214_p5 = scmp.lt.s32.totalorder (!%p183_p3), %s752_s15, 7  ;;  %p216_p6 = scmp.lt.s32.totalorder (!%p183_p3), %s756_s16, 1 }
   0x9   : > { %s917_s21 = smov (%p29_p4, %s915_s21), 0  ;;  %186 = sbr.rel (%p183_p3) target bundleno = 445 (0x1bd), region = 32 }
   0xa   : > { %p637_p7 = scmp.ne.s32.totalorder (!%p183_p3), %s752_s15, 0 }
   0xe   : > { %s215_s22 = scalar_select %p214_p5, %s752_s15, 7 }
   0xf   : > { %s919_s16 = smov (!%p216_p6, %s756_s16), 1  ;;  %234 = sbr.rel (%p637_p7) target bundleno = 22 (0x16), region = 36 }
  0x10   : > { %s633_s23 = sshll.u32 %s215_s22, 1  ;;  %s635_s25 = sshll.u32 %s919_s16, 2 }
  0x11   : > { %s219_s24 = sadd.s32 %s633_s23, %s919_s16  ;;  %s841_s29 = scalar_lea.vmem %s906_s3, %s635_s25 }
  0x12   : > { %s634_s26 = sshll.u32 %s219_s24, 1  ;;  %s636_s7 = sshll.u32 %s919_s16, 3 }
  0x13   : > { %s221_s6 = scalar_lea.vmem %s905_s2, %s634_s26  ;;  %s849_s10 = scalar_lea.vmem %s907_s4, %s636_s7 }
  0x14   : > { %v770_v0 = vmov 0.0  }
  0x15   : > { %235 = vst [vmem:[#allocation2] sm:$0xff] %v770_v0 }
  0x16 PF: > { %v236_v1 = vld [vmem:[%s221_s6] sm:$0x3]  ;;  %s771_s11 = smov 122   ;;  %s772_s12 = smov 123   ;;  %v774_v2 = vmov 0   ;;  %vm257_vm0 = vcmask 1041408  }
  0x17   : > { %327 = vrot.lane.b32.xlu1 %v236_v1, %s771_s11  ;;  %297 = vrot.lane.b32.xlu0 %v236_v1, %s772_s12  ;;  %s773_s13 = smov 127   ;;  %s775_s14 = smov 98   ;;  %v278_v4 = vsel %vm257_vm0, %v236_v1, 0  ;;  %vm253_vm1 = vcmask 31744   ;;  %vm251_vm2 = vcmask 1039360   ;;  %vm301_vm3 = vcmask 1006592  }
  0x18   : > { %247 = vrot.lane.b32.xlu2 %v236_v1, %s773_s13  ;;  %s776_s16 = smov 97   ;;  %s777_s22 = smov 103   ;;  %287 = vmatpush.bf16.msra.mxu1 %v278_v4  ;;  %vm331_vm4 = vcmask 998400   ;;  %vm421_vm5 = vcmask 801792   ;;  %vm361_vm6 = vcmask 842752   ;;  %vm451_vm7 = vcmask 793600  }
  0x19   : > { %s778_s23 = smov 102   ;;  %s672_s24 = sshll.u32 %s752_s15, 5  ;;  %vm391_vm8 = vcmask 834560  }
  0x1a   : > { %s857_s27 = scalar_lea.vmem %s903_s0, %s672_s24  ;;  %p669_p8 = scmp.ne.s32.totalorder %s752_s15, 7 }
  0x1b   : > { %v240_v5 = vld [vmem:[%s857_s27] sm:$0xf]  ;;  %v642_v9 = vld [vmem:[%s857_s27 + $0x4] sm:$0xf]  ;;  %v647_v18 = vld [vmem:[%s857_s27 + $0x8] sm:$0xf] }
  0x1c   : > { %644 = vmatmul.msk.bf16.vlgmr.msra.gmra.mxu1 %vm253_vm1, %v240_v5  ;;  %v651_v19 = vld [vmem:[%s857_s27 + $0xc] sm:$0xf]  ;;  %v663_v32 = vld [vmem:[%s857_s27 + $0x18] sm:$0xf]  ;;  %v655_v33 = vld [vmem:[%s857_s27 + $0x10] sm:$0xf] }
  0x1d   : > { %v667_v34 = vld [vmem:[%s857_s27 + $0x1c] sm:$0xf]  ;;  %v659_v39 = vld [vmem:[%s857_s27 + $0x14] sm:$0xf]  ;;  %v473_v59 = vld [vmem:[#allocation2] sm:$0xff] }
  0x1f   : > { %329 = vrot.lane.b32.xlu1 %v774_v2, %s771_s11  ;;  %299 = vrot.lane.b32.xlu0 %v774_v2, %s772_s12 }
  0x20   : > { %249 = vrot.lane.b32.xlu2 %v774_v2, %s773_s13 }
  0x27   : > { %419 = vrot.lane.b32.xlu1 %v774_v2, %s775_s14  ;;  %417 = vrot.lane.b32.xlu0 %v236_v1, %s775_s14 }
  0x28   : > { %447 = vrot.lane.b32.xlu2 %v236_v1, %s776_s16 }
  0x2f   : > { %357 = vrot.lane.b32.xlu1 %v236_v1, %s777_s22  ;;  %449 = vrot.lane.b32.xlu0 %v774_v2, %s776_s16 }
  0x30   : > { %359 = vrot.lane.b32.xlu2 %v774_v2, %s777_s22 }
  0x37   : > { %389 = vrot.lane.b32.xlu1 %v774_v2, %s778_s23  ;;  %387 = vrot.lane.b32.xlu0 %v236_v1, %s778_s23 }
  0x72   : > { %v248_v3 = vpop.permute.xlu2 %247 }
  0x7a   : > { %v250_v6 = vpop.permute.xlu2 %249 }
  0x7b   : > { %v252_v7 = vsel %vm251_vm2, %v248_v3, %v250_v6 }
  0x7c   : > { %v259_v8 = vsel %vm257_vm0, %v252_v7, 0 }
  0x7d   : > { %268 = vmatpush.bf16.msra.mxu0 %v259_v8 }
  0x80   : > { %643 = vmatmul.msk.bf16.vlgmr.msra.gmra.mxu0 %vm253_vm1, %v642_v9 }
  0x82   : > { %v448_v20 = vpop.permute.xlu2 %447 }
  0x89   : > { %v328_v10 = vpop.permute.xlu1 %327  ;;  %v298_v11 = vpop.permute.xlu0 %297 }
  0x8a   : > { %v360_v25 = vpop.permute.xlu2 %359 }
  0x91   : > { %v330_v12 = vpop.permute.xlu1 %329  ;;  %v300_v13 = vpop.permute.xlu0 %299 }
  0x92   : > { %v302_v14 = vsel %vm301_vm3, %v298_v11, %v300_v13  ;;  %v332_v15 = vsel %vm331_vm4, %v328_v10, %v330_v12 }
  0x93   : > { %v307_v16 = vsel %vm257_vm0, %v302_v14, 0  ;;  %v337_v17 = vsel %vm257_vm0, %v332_v15, 0 }
  0x94   : > { %316 = vmatpush.bf16.msra.mxu2 %v307_v16  ;;  %346 = vmatpush.bf16.msra.mxu3 %v337_v17 }
  0x97   : > { %648 = vmatmul.msk.bf16.vlgmr.msra.gmra.mxu2 %vm253_vm1, %v647_v18  ;;  %652 = vmatmul.msk.bf16.vlgmr.msra.gmra.mxu3 %vm253_vm1, %v651_v19 }
  0x99   : > { %v420_v21 = vpop.permute.xlu1 %419  ;;  %v418_v22 = vpop.permute.xlu0 %417 }
  0x9a   : > { %v422_v23 = vsel %vm421_vm5, %v418_v22, %v420_v21  ;;  %v289_v40 = vpop.f32.mrf.mxu1 }
  0x9b   : > { %v427_v24 = vsel %vm257_vm0, %v422_v23, 0 }
  0x9c   : > { %436 = vmatpush.bf16.msrb.mxu2 %v427_v24 }
  0xa1   : > { %v358_v26 = vpop.permute.xlu1 %357  ;;  %v450_v27 = vpop.permute.xlu0 %449 }
  0xa2   : > { %v362_v28 = vsel %vm361_vm6, %v358_v26, %v360_v25  ;;  %v452_v29 = vsel %vm451_vm7, %v448_v20, %v450_v27  ;;  %v291_v41 = vpop.f32.mrf.mxu1 }
  0xa3   : > { %v367_v30 = vsel %vm257_vm0, %v362_v28, 0  ;;  %v457_v31 = vsel %vm257_vm0, %v452_v29, 0 }
  0xa4   : > { %376 = vmatpush.bf16.msrb.mxu0 %v367_v30  ;;  %466 = vmatpush.bf16.msrb.mxu3 %v457_v31 }
  0xa7   : > { %664 = vmatmul.msk.bf16.vlgmr.msrb.gmra.mxu2 %vm253_vm1, %v663_v32  ;;  %656 = vmatmul.msk.bf16.vlgmr.msrb.gmra.mxu0 %vm253_vm1, %v655_v33 }
  0xa8   : > { %668 = vmatmul.msk.bf16.vlgmr.msrb.gmra.mxu3 %vm253_vm1, %v667_v34 }
  0xa9   : > { %v390_v35 = vpop.permute.xlu1 %389  ;;  %v388_v36 = vpop.permute.xlu0 %387 }
  0xaa   : > { %v392_v37 = vsel %vm391_vm8, %v388_v36, %v390_v35 }
  0xab   : > { %v397_v38 = vsel %vm257_vm0, %v392_v37, 0 }
  0xac   : > { %406 = vmatpush.bf16.msrb.mxu1 %v397_v38 }
  0xaf   : > { %660 = vmatmul.msk.bf16.vlgmr.msrb.gmra.mxu1 %vm253_vm1, %v659_v39 }
  0xfd   : > { %v270_v42 = vpop.f32.mrf.mxu0 }
  0xfe   : > { %v290_v46 = vadd.f32 %v289_v40, %v270_v42 }
 0x105   : > { %v272_v43 = vpop.f32.mrf.mxu0 }
 0x11a   : > { %v318_v44 = vpop.f32.mrf.mxu2  ;;  %v348_v45 = vpop.f32.mrf.mxu3 }
 0x11b   : > { %v322_v50 = vadd.f32 %v318_v44, %v290_v46 }
 0x11d   : > { %v352_v51 = vadd.f32 %v348_v45, %v322_v50 }
 0x122   : > { %v320_v47 = vpop.f32.mrf.mxu2  ;;  %v350_v48 = vpop.f32.mrf.mxu3 }
 0x124   : > { %v378_v49 = vpop.f32.mrf.mxu0 }
 0x125   : > { %v382_v53 = vadd.f32 %v378_v49, %v352_v51 }
 0x12a   : > { %v438_v52 = vpop.f32.mrf.mxu2 }
 0x12b   : > { %v468_v54 = vpop.f32.mrf.mxu3 }
 0x12c   : > { %v408_v55 = vpop.f32.mrf.mxu1  ;;  %v380_v56 = vpop.f32.mrf.mxu0 }
 0x12d   : > { %v412_v57 = vadd.f32 %v408_v55, %v382_v53 }
 0x12f   : > { %v442_v58 = vadd.f32 %v438_v52, %v412_v57 }
 0x131   : > { %v472_v60 = vadd.f32 %v468_v54, %v442_v58  ;;  %479 = sbr.rel (%p669_p8) target bundleno = 445 (0x1bd), region = 40 }
 0x132   : > { %v440_v61 = vpop.f32.mrf.mxu2 }
 0x133   : > { %v474_v62 = vadd.f32 %v473_v59, %v472_v60  ;;  %v470_v63 = vpop.f32.mrf.mxu3 }
 0x134   : > { %v410_v0 = vpop.f32.mrf.mxu1 }
 0x135   : > { %475 = vst [vmem:[#allocation2] sm:$0xff] %v474_v62 }
 0x136   : > { %v729_v2 = vld [vmem:[%s904_s1] ss:$0 sm:$0xff]  ;;  %vm493_vm9 = vcmask 7168   ;;  %vm495_vm10 = vcmask 15360  }
 0x13c   : > { %v480_v1 = vld [vmem:[#allocation2] sm:$0xff] }
 0x13d   : > { %v485_v3 = vmul.f32 %v729_v2, %v480_v1 }
 0x13f   : > { %488 = vadd.xlane.f32.xlu0 %v485_v3  ;;  %v486_v4 = vpack.c.bf16 %v485_v3, %v485_v3  ;;  %v490_v5 = vmul.f32 %v485_v3, %v485_v3 }
 0x141   : > { %487 = vst [vmem:[%s841_s29] sm:$0xf] %v486_v4 }
 0x147   : > { %491 = vadd.xlane.f32.xlu0 %v490_v5 }
 0x1b2   : > { %v489_v6 = vpop.xlane.xlu0 %488 }
 0x1ba   : > { %v492_v7 = vpop.xlane.xlu0 %491 }
 0x1bb   : > { %v494_v8 = vsel %vm493_vm9, %v489_v6, %v492_v7 }
 0x1bc   : > { %496 = vst.msk [vmem:[%s849_s10] sm:$0xff] %vm495_vm10, %v494_v8 }
 0x1bd PF: > { %s15_s19 = sadd.s32 1, %s768_s19   ;;  %s908_s15 = smov %s760_s17 }
 0x1be   : > { %p12_p9 = scmp.ge.s32.totalorder %s15_s19, 18   ;;  %s909_s16 = smov %s764_s18 }
 0x1bf   : > { %s910_s17 = smov %s913_s20  ;;  %s911_s18 = smov %s917_s21 }
 0x1c0   :  { %14 = sbr.rel (!%p12_p9) target bundleno = 3 (0x3), region = 90 }

// kernel: block_forward.3
= control target key start
LH: loop header
LB: loop body
LE: loop exit
PB: predicated region body
PF: predicated region fallthrough
CT: control target
= control target key end

     0   :  { %s285_s12 = smov 0   ;;  %s308_s0 = inlined_call_operand.vmem [shape: f32[8,1], index: 0, kind: input, shape index: {}]   ;;  %s309_s1 = inlined_call_operand.vmem [shape: f32[8,1], index: 1, kind: input, shape index: {}]   ;;  %s310_s2 = inlined_call_operand.vmem [shape: bf16[8,256], index: 2, kind: input, shape index: {}]   ;;  %s311_s3 = inlined_call_operand.vmem [shape: f32[2,8,128], index: 3, kind: output, shape index: {}]  }
   0x1 LB: > { %s237_s13 = sadd.s32 4294967295, %s262_s12   ;;  %p241_p0 = scmp.ge.s32.totalorder %s262_s12, 1  ;;  %s262_s12 = sphi %s285_s12, %s13_s12  }
   0x2   : > { %p136_p1 = scmp.lt.s32.totalorder %s262_s12, 3 }
   0x4   : > { %p137_p2 = pnand %p241_p0, %p136_p1 }
   0x5   : > { %p158_p3 = scmp.lt.s32.totalorder (!%p137_p2), %s237_s13, 1 }
   0x6   : > { %140 = sbr.rel (%p137_p2) target bundleno = 141 (0x8d), region = 32 }
   0xb   : > { %v168_v0 = vld [vmem:[%s308_s0] sm:$0xff]  ;;  %v264_v1 = vmov 0   ;;  %s313_s13 = smov (!%p158_p3, %s237_s13), 1 }
   0xc   : > { %255 = vset.pattern.permute.xlu0 %v264_v1  ;;  %v175_v2 = vld [vmem:[%s309_s1] sm:$0xff]  ;;  %s242_s18 = sshll.u32 %s313_s13, 2  ;;  %s243_s22 = sshll.u32 %s313_s13, 3 }
   0xd   : > { %171 = vperm.xlu0 %255, %v168_v0   ;;  %s161_s21 = scalar_lea.vmem %s310_s2, %s242_s18  ;;  %s165_s25 = scalar_lea.vmem %s311_s3, %s243_s22 }
   0xe   : > { %v166_v4 = vld [vmem:[%s161_s21] sm:$0xf] }
   0xf   : > { %v167_v5 = vunpack.c.l.bf16 %v166_v4 }
  0x15   : > { %178 = vperm.xlu0 %255, %v175_v2  }
  0x7f   : > { %v172_v3 = vpop.permute.xlu0 %171 }
  0x80   : > { %v174_v6 = vmul.f32 %v172_v3, %v167_v5 }
  0x87   : > { %v179_v7 = vpop.permute.xlu0 %178 }
  0x88   : > { %v181_v8 = vadd.f32 %v179_v7, %v174_v6 }
  0x8a   : > { %v182_v9 = vmax.f32 %v181_v8, 0.0 }
  0x8c   : > { %183 = vst [vmem:[%s165_s25] sm:$0xff] %v182_v9 }
  0x8d PF: > { %s13_s12 = sadd.s32 1, %s262_s12  }
  0x8e   : > { %p10_p4 = scmp.ge.s32.totalorder %s13_s12, 4  }
  0x90   :  { %12 = sbr.rel (!%p10_p4) target bundleno = 1 (0x1), region = 62 }

</bundles_post_ra>
